<compile_context>
chip_gen: v5e
topology: v5e:2x2
jax: 0.10.0
libtpu: 0.0.40
codegen_flags: <defaults>
</compile_context>

<pallas_src>
import functools
import math

import jax
import jax.numpy as jnp
from jax.experimental import pallas as pl
from jax.experimental.pallas import tpu as pltpu


def _vmem_limit_bytes():
    """Generation-aware scoped-VMEM limit (~75% of physical, capped)."""
    try:
        phys = int(pltpu.get_tpu_info().vmem_capacity_bytes)
    except Exception:  # non-TPU trace / API drift: fall back to a safe value.
        phys = 128 * 1024 * 1024
    return min(max(phys * 3 // 4, 32 * 1024 * 1024), 100 * 1024 * 1024)


def _fill_im2col(col_ref, x_ref, *, k, pad, t, v, t_out):
    """Build the (K*Cin, T_out*V) im2col matrix for a stride-1 temporal conv.

    Tap dk contributes x lane-shifted by (dk - pad)*V; out-of-range halo lanes
    are zero.  All slice bounds are static Python ints, so every write is a
    plain (possibly masked) VMEM store -- no dynamic relayouts inside the MXU
    loop.  Halo zeros are re-written every grid step (they are tiny) so the
    kernel stays correct when the "parallel" grid axis is split across
    TensorCores (a pl.when(program_id==0) guard would leave core>0's persistent
    scratch uninitialized).
    """
    cin = x_ref.shape[0]
    tv_in = t * v
    tv_out = t_out * v
    for dk in range(k):                       # k is tiny & static -> unrolled
        r0, r1 = dk * cin, (dk + 1) * cin
        s = (dk - pad) * v                    # lane shift for this tap
        dst_lo = max(0, -s)
        dst_hi = min(tv_out, tv_in - s)
        if dst_lo > 0:
            col_ref[r0:r1, 0:dst_lo] = jnp.zeros((cin, dst_lo), col_ref.dtype)
        if dst_hi < tv_out:
            col_ref[r0:r1, dst_hi:tv_out] = jnp.zeros(
                (cin, tv_out - dst_hi), col_ref.dtype)
        if dst_hi > dst_lo:
            col_ref[r0:r1, dst_lo:dst_hi] = x_ref[:, dst_lo + s:dst_hi + s]


def _conv_stats_kernel(x_ref, w_ref, stats_ref, col_ref, *, k, pad, t, v, t_out):
    """Stats-only pass: per-sample per-channel [sum, centered sum-of-squares].

    x_ref     : (Cin, T*V)        one sample, T*V flattened into lanes
    w_ref     : (Cout, K*Cin)     fused conv weight
    stats_ref : (Cout, 2)         [:,0]=sum, [:,1]=centered SSQ over T_out*V
    col_ref   : (K*Cin, T_out*V)  im2col VMEM scratch
    """
    _fill_im2col(col_ref, x_ref, k=k, pad=pad, t=t, v=v, t_out=t_out)
    # Single fused MXU contraction over K*Cin (f32 accumulation).
    acc = jnp.dot(w_ref[...], col_ref[...], preferred_element_type=jnp.float32)
    s = jnp.sum(acc, axis=1, keepdims=True)                  # (Cout, 1)
    mu = s * (1.0 / (t_out * v))
    d = acc - mu
    m2 = jnp.sum(d * d, axis=1, keepdims=True)               # centered SSQ
    stats_ref[...] = jnp.concatenate([s, m2], axis=1)


def _conv_bn_kernel(x_ref, w_ref, scale_ref, shift_ref, o_ref, col_ref,
                    *, k, pad, t, v, t_out):
    """Conv recompute with BN fused as a single per-channel FMA epilogue."""
    _fill_im2col(col_ref, x_ref, k=k, pad=pad, t=t, v=v, t_out=t_out)
    acc = jnp.dot(w_ref[...], col_ref[...], preferred_element_type=jnp.float32)
    o_ref[...] = (acc * scale_ref[...] + shift_ref[...]).astype(o_ref.dtype)
    # NOTE: conv bias intentionally dropped -- training-mode BN subtracts the
    # batch mean, which cancels any constant per-channel bias exactly.


def _bn_apply_kernel(y_ref, scale_ref, shift_ref, o_ref):
    """Lane-dense BN epilogue for the generic stride>1 path."""
    o_ref[...] = (y_ref[...].astype(jnp.float32) * scale_ref[...]
                  + shift_ref[...]).astype(o_ref.dtype)


def unit_tcn_forward(x_nchw, w_oihw, bias, gamma, beta, *,
                     kernel_size=5, stride=1, eps=1e-5):
    """UnitTCN forward.  x_nchw: (N, Cin, T, V) -> (N, Cout, T_out, V)."""
    n, cin, t, v = x_nchw.shape
    k = kernel_size
    pad = (k - 1) // 2
    cout = w_oihw.shape[0]
    t_out = (t + 2 * pad - k) // stride + 1
    t1 = t + 2 * pad - k + 1                 # stride-1 (full-resolution) extent

    dtype = x_nchw.dtype                     # keep operands native (bf16 stays bf16)
    del bias                                 # cancelled exactly by training-mode BN

    # Conv weight (Cout, Cin, K, 1) -> (Cout, K*Cin); row-block order matches the
    # im2col tap blocks: column dk*Cin + c  <->  w[o, c, dk, 0].
    w_flat = jnp.transpose(w_oihw[:, :, :, 0], (0, 2, 1)).reshape(cout, k * cin)
    w_flat = w_flat.astype(dtype)

    x2 = x_nchw.reshape(n, cin, t * v)       # contiguous NCHW view, T*V on lanes
    cparams = pltpu.CompilerParams(dimension_semantics=("parallel",),
                                   vmem_limit_bytes=_vmem_limit_bytes())
    col_scratch = pltpu.VMEM((k * cin, t1 * v), dtype)

    gamma32 = gamma.astype(jnp.float32)
    beta32 = beta.astype(jnp.float32)

    if stride == 1:
        # ---- Pass 1: stats only -- no conv output round-trips HBM. ----
        stats = pl.pallas_call(
            functools.partial(_conv_stats_kernel, k=k, pad=pad, t=t, v=v,
                              t_out=t_out),
            grid=(n,),
            in_specs=[pl.BlockSpec((None, cin, t * v), lambda i: (i, 0, 0)),
                      pl.BlockSpec((cout, k * cin), lambda i: (0, 0))],
            out_specs=pl.BlockSpec((None, cout, 2), lambda i: (i, 0, 0)),
            out_shape=jax.ShapeDtypeStruct((n, cout, 2), jnp.float32),
            scratch_shapes=[col_scratch],
            compiler_params=cparams,
        )(x2, w_flat)

        # Chan-style combination of per-sample (sum, centered-SSQ) partials.
        s = stats[:, :, 0]                               # (N, Cout)
        m2 = stats[:, :, 1]                              # (N, Cout)
        cnt = jnp.float32(t_out * v)
        tot = jnp.float32(n * t_out * v)
        mean = jnp.sum(s, axis=0) / tot                  # (Cout,)
        d = s / cnt - mean[None, :]
        var = (jnp.sum(m2, axis=0) + cnt * jnp.sum(d * d, axis=0)) / tot  # biased
        inv = jax.lax.rsqrt(var + eps)
        scale = (gamma32 * inv).reshape(cout, 1)
        shift = (beta32 - mean * gamma32 * inv).reshape(cout, 1)

        # ---- Pass 2: recompute conv with BN folded in (single FMA epilogue). ----
        out = pl.pallas_call(
            functools.partial(_conv_bn_kernel, k=k, pad=pad, t=t, v=v,
                              t_out=t_out),
            grid=(n,),
            in_specs=[pl.BlockSpec((None, cin, t * v), lambda i: (i, 0, 0)),
                      pl.BlockSpec((cout, k * cin), lambda i: (0, 0)),
                      pl.BlockSpec((cout, 1), lambda i: (0, 0)),
                      pl.BlockSpec((cout, 1), lambda i: (0, 0))],
            out_specs=pl.BlockSpec((None, cout, t_out * v), lambda i: (i, 0, 0)),
            out_shape=jax.ShapeDtypeStruct((n, cout, t_out * v), jnp.float32),
            scratch_shapes=[col_scratch],
            compiler_params=cparams,
        )(x2, w_flat, scale, shift)
        return out.reshape(n, cout, t_out, v)

    # ---- stride > 1: full-resolution conv, strided selection, BN apply. ----
    # TODO(synk): fuse the strided path (strided im2col + in-kernel stats) like
    # the stride==1 path; this keeps it correct with lane-dense layouts only.
    unit_scale = jnp.ones((cout, 1), jnp.float32)
    zero_shift = jnp.zeros((cout, 1), jnp.float32)
    y1 = pl.pallas_call(
        functools.partial(_conv_bn_kernel, k=k, pad=pad, t=t, v=v, t_out=t1),
        grid=(n,),
        in_specs=[pl.BlockSpec((None, cin, t * v), lambda i: (i, 0, 0)),
                  pl.BlockSpec((cout, k * cin), lambda i: (0, 0)),
                  pl.BlockSpec((cout, 1), lambda i: (0, 0)),
                  pl.BlockSpec((cout, 1), lambda i: (0, 0))],
        out_specs=pl.BlockSpec((None, cout, t1 * v), lambda i: (i, 0, 0)),
        out_shape=jax.ShapeDtypeStruct((n, cout, t1 * v), jnp.float32),
        scratch_shapes=[col_scratch],
        compiler_params=cparams,
    )(x2, w_flat, unit_scale, zero_shift)

    y = y1.reshape(n, cout, t1, v)[:, :, ::stride, :]          # (N, Cout, T_out, V)
    mean = jnp.mean(y, axis=(0, 2, 3))
    var = jnp.mean(jnp.square(y - mean[None, :, None, None]), axis=(0, 2, 3))
    inv = jax.lax.rsqrt(var + eps)
    scale = (gamma32 * inv).reshape(cout, 1)
    shift = (beta32 - mean * gamma32 * inv).reshape(cout, 1)

    out = pl.pallas_call(
        _bn_apply_kernel,
        grid=(n,),
        in_specs=[pl.BlockSpec((None, cout, t_out * v), lambda i: (i, 0, 0)),
                  pl.BlockSpec((cout, 1), lambda i: (0, 0)),
                  pl.BlockSpec((cout, 1), lambda i: (0, 0))],
        out_specs=pl.BlockSpec((None, cout, t_out * v), lambda i: (i, 0, 0)),
        out_shape=jax.ShapeDtypeStruct((n, cout, t_out * v), jnp.float32),
        compiler_params=cparams,
    )(y.reshape(n, cout, t_out * v), scale, shift)
    return out.reshape(n, cout, t_out, v)


def _reference_forward(x_nchw, w_oihw, bias, gamma, beta, *,
                       kernel_size=5, stride=1, eps=1e-5):
    """Pure-JAX reference (conv2d + training-mode BN)."""
    pad = (kernel_size - 1) // 2
    y = jax.lax.conv_general_dilated(
        x_nchw, w_oihw, window_strides=(stride, 1),
        padding=((pad, pad), (0, 0)),
        dimension_numbers=("NCHW", "OIHW", "NCHW"))
    y = y + bias[None, :, None, None]
    mean = jnp.mean(y, axis=(0, 2, 3), keepdims=True)
    var = jnp.mean((y - mean) ** 2, axis=(0, 2, 3), keepdims=True)      # biased
    yhat = (y - mean) * jax.lax.rsqrt(var + eps)
    return yhat * gamma[None, :, None, None] + beta[None, :, None, None]


if __name__ == "__main__":
    # Small shapes consistent with UnitTCN: x is (N, C_in, T, V).
    N, C_IN, C_OUT, T, V, K = 2, 4, 8, 16, 16, 5

    key = jax.random.PRNGKey(0)
    kx, kw = jax.random.split(key)
    x = jax.random.normal(kx, (N, C_IN, T, V), dtype=jnp.float32)

    # Deterministic parameter init mirroring the module's __init__:
    #  conv weight: kaiming_normal_(fan_out) -> N(0, sqrt(2/fan_out)),
    #  conv bias: 0 ;  BN gamma: 1 ;  BN beta: 0.
    fan_out = C_OUT * K * 1
    w = jax.random.normal(kw, (C_OUT, C_IN, K, 1), dtype=jnp.float32) * math.sqrt(2.0 / fan_out)
    b = jnp.zeros((C_OUT,), dtype=jnp.float32)
    gamma = jnp.ones((C_OUT,), dtype=jnp.float32)
    beta = jnp.zeros((C_OUT,), dtype=jnp.float32)

    for stride in (1, 2):
        out = jax.block_until_ready(
            unit_tcn_forward(x, w, b, gamma, beta, kernel_size=K, stride=stride))
        ref = jax.block_until_ready(
            _reference_forward(x, w, b, gamma, beta, kernel_size=K, stride=stride))
        assert out.shape == ref.shape, (out.shape, ref.shape)
        err = float(jnp.max(jnp.abs(out - ref)))
        assert jnp.allclose(out, ref, atol=2e-3, rtol=2e-3), (stride, err)

    print("KERNEL_OK")
</pallas_src>

<mosaic_0001>
module attributes {stable_mosaic.version = 11 : i64} {
  func.func @_conv_stats_kernel(%arg0: i32, %arg1: memref<1x4x256xf32, #tpu.memory_space<vmem>>, %arg2: memref<8x20xf32, #tpu.memory_space<vmem>>, %arg3: memref<1x8x2xf32, #tpu.memory_space<vmem>>, %arg4: memref<20x256xf32, #tpu.memory_space<vmem>>) attributes {dimension_semantics = [#tpu.dimension_semantics<parallel>], iteration_bounds = array<i64: 2>, scalar_prefetch = 0 : i64, scratch_operands = 1 : i64, tpu.core_type = #tpu.core_type<tc>, window_params = [{transform_indices = @transform_0, window_bounds = array<i64: 1, 4, 256>}, {pipeline_mode = #tpu.pipeline_mode<synchronous>, transform_indices = @transform_1, window_bounds = array<i64: 8, 20>}, {transform_indices = @transform_2, window_bounds = array<i64: 1, 8, 2>}]} {
    %cst = arith.constant 0.000000e+00 : f32
    %0 = vector.broadcast %cst : f32 to vector<4x32xf32>
    %c0 = arith.constant 0 : index
    %c0_0 = arith.constant 0 : index
    %1 = vector.load %arg4[%c0, %c0_0] : memref<20x256xf32, #tpu.memory_space<vmem>>, vector<4x32xf32>
    tpu.vector_store %arg4[%c0, %c0_0], %0 {strides = array<i32>} : memref<20x256xf32, #tpu.memory_space<vmem>>, vector<4x32xf32>,
    %c0_1 = arith.constant 0 : index
    %c0_2 = arith.constant 0 : index
    %c0_3 = arith.constant 0 : index
    %2 = vector.load %arg1[%c0_1, %c0_2, %c0_3] : memref<1x4x256xf32, #tpu.memory_space<vmem>>, vector<1x4x224xf32>
    %3 = vector.shape_cast %2 : vector<1x4x224xf32> to vector<4x224xf32>
    %c0_4 = arith.constant 0 : index
    %c32 = arith.constant 32 : index
    %4 = vector.load %arg4[%c0_4, %c32] : memref<20x256xf32, #tpu.memory_space<vmem>>, vector<4x224xf32>
    tpu.vector_store %arg4[%c0_4, %c32], %3 {strides = array<i32>} : memref<20x256xf32, #tpu.memory_space<vmem>>, vector<4x224xf32>,
    %cst_5 = arith.constant 0.000000e+00 : f32
    %5 = vector.broadcast %cst_5 : f32 to vector<4x16xf32>
    %c4 = arith.constant 4 : index
    %c0_6 = arith.constant 0 : index
    %6 = vector.load %arg4[%c4, %c0_6] : memref<20x256xf32, #tpu.memory_space<vmem>>, vector<4x16xf32>
    tpu.vector_store %arg4[%c4, %c0_6], %5 {strides = array<i32>} : memref<20x256xf32, #tpu.memory_space<vmem>>, vector<4x16xf32>,
    %c0_7 = arith.constant 0 : index
    %c0_8 = arith.constant 0 : index
    %c0_9 = arith.constant 0 : index
    %7 = vector.load %arg1[%c0_7, %c0_8, %c0_9] : memref<1x4x256xf32, #tpu.memory_space<vmem>>, vector<1x4x240xf32>
    %8 = vector.shape_cast %7 : vector<1x4x240xf32> to vector<4x240xf32>
    %c4_10 = arith.constant 4 : index
    %c16 = arith.constant 16 : index
    %9 = vector.load %arg4[%c4_10, %c16] : memref<20x256xf32, #tpu.memory_space<vmem>>, vector<4x240xf32>
    tpu.vector_store %arg4[%c4_10, %c16], %8 {strides = array<i32>} : memref<20x256xf32, #tpu.memory_space<vmem>>, vector<4x240xf32>,
    %c0_11 = arith.constant 0 : index
    %c0_12 = arith.constant 0 : index
    %c0_13 = arith.constant 0 : index
    %10 = vector.load %arg1[%c0_11, %c0_12, %c0_13] : memref<1x4x256xf32, #tpu.memory_space<vmem>>, vector<1x4x256xf32>
    %11 = vector.shape_cast %10 : vector<1x4x256xf32> to vector<4x256xf32>
    %c8 = arith.constant 8 : index
    %c0_14 = arith.constant 0 : index
    %12 = vector.load %arg4[%c8, %c0_14] : memref<20x256xf32, #tpu.memory_space<vmem>>, vector<4x256xf32>
    tpu.vector_store %arg4[%c8, %c0_14], %11 {strides = array<i32>} : memref<20x256xf32, #tpu.memory_space<vmem>>, vector<4x256xf32>,
    %cst_15 = arith.constant 0.000000e+00 : f32
    %13 = vector.broadcast %cst_15 : f32 to vector<4x16xf32>
    %c12 = arith.constant 12 : index
    %c240 = arith.constant 240 : index
    %14 = vector.load %arg4[%c12, %c240] : memref<20x256xf32, #tpu.memory_space<vmem>>, vector<4x16xf32>
    tpu.vector_store %arg4[%c12, %c240], %13 {strides = array<i32>} : memref<20x256xf32, #tpu.memory_space<vmem>>, vector<4x16xf32>,
    %c0_16 = arith.constant 0 : index
    %c0_17 = arith.constant 0 : index
    %c16_18 = arith.constant 16 : index
    %15 = vector.load %arg1[%c0_16, %c0_17, %c16_18] : memref<1x4x256xf32, #tpu.memory_space<vmem>>, vector<1x4x240xf32>
    %16 = vector.shape_cast %15 : vector<1x4x240xf32> to vector<4x240xf32>
    %c12_19 = arith.constant 12 : index
    %c0_20 = arith.constant 0 : index
    %17 = vector.load %arg4[%c12_19, %c0_20] : memref<20x256xf32, #tpu.memory_space<vmem>>, vector<4x240xf32>
    tpu.vector_store %arg4[%c12_19, %c0_20], %16 {strides = array<i32>} : memref<20x256xf32, #tpu.memory_space<vmem>>, vector<4x240xf32>,
    %cst_21 = arith.constant 0.000000e+00 : f32
    %18 = vector.broadcast %cst_21 : f32 to vector<4x32xf32>
    %c16_22 = arith.constant 16 : index
    %c224 = arith.constant 224 : index
    %19 = vector.load %arg4[%c16_22, %c224] : memref<20x256xf32, #tpu.memory_space<vmem>>, vector<4x32xf32>
    tpu.vector_store %arg4[%c16_22, %c224], %18 {strides = array<i32>} : memref<20x256xf32, #tpu.memory_space<vmem>>, vector<4x32xf32>,
    %c0_23 = arith.constant 0 : index
    %c0_24 = arith.constant 0 : index
    %c32_25 = arith.constant 32 : index
    %20 = vector.load %arg1[%c0_23, %c0_24, %c32_25] : memref<1x4x256xf32, #tpu.memory_space<vmem>>, vector<1x4x224xf32>
    %21 = vector.shape_cast %20 : vector<1x4x224xf32> to vector<4x224xf32>
    %c16_26 = arith.constant 16 : index
    %c0_27 = arith.constant 0 : index
    %22 = vector.load %arg4[%c16_26, %c0_27] : memref<20x256xf32, #tpu.memory_space<vmem>>, vector<4x224xf32>
    tpu.vector_store %arg4[%c16_26, %c0_27], %21 {strides = array<i32>} : memref<20x256xf32, #tpu.memory_space<vmem>>, vector<4x224xf32>,
    %c0_28 = arith.constant 0 : index
    %c0_29 = arith.constant 0 : index
    %23 = vector.load %arg2[%c0_28, %c0_29] : memref<8x20xf32, #tpu.memory_space<vmem>>, vector<8x20xf32>
    %c0_30 = arith.constant 0 : index
    %c0_31 = arith.constant 0 : index
    %24 = vector.load %arg4[%c0_30, %c0_31] : memref<20x256xf32, #tpu.memory_space<vmem>>, vector<20x256xf32>
    %cst_32 = arith.constant dense<0.000000e+00> : vector<8x256xf32>
    %25 = tpu.matmul %23, %24, %cst_32 {dimension_numbers = #tpu.dot_dimension_numbers<[1], [0], [0], [1], [0, 0, 1, 1], [], []>} : vector<8x20xf32>, vector<20x256xf32>, vector<8x256xf32> -> vector<8x256xf32>
    %cst_33 = arith.constant dense<0.000000e+00> : vector<8xf32>
    %26 = vector.multi_reduction <add>, %25, %cst_33 [1] : vector<8x256xf32> to vector<8xf32>
    %27 = vector.shape_cast %26 : vector<8xf32> to vector<8x1xf32>
    %cst_34 = arith.constant 3.906250e-03 : f32
    %28 = vector.broadcast %cst_34 : f32 to vector<8x1xf32>
    %29 = arith.mulf %27, %28 : vector<8x1xf32>
    %30 = vector.broadcast %29 : vector<8x1xf32> to vector<8x256xf32>
    %31 = arith.subf %25, %30 : vector<8x256xf32>
    %32 = arith.mulf %31, %31 : vector<8x256xf32>
    %cst_35 = arith.constant dense<0.000000e+00> : vector<8xf32>
    %33 = vector.multi_reduction <add>, %32, %cst_35 [1] : vector<8x256xf32> to vector<8xf32>
    %34 = vector.shape_cast %33 : vector<8xf32> to vector<8x1xf32>
    %35 = tpu.concatenate %27, %34 in 1 : vector<8x1xf32>, vector<8x1xf32> -> vector<8x2xf32>
    %c0_36 = arith.constant 0 : index
    %c0_37 = arith.constant 0 : index
    %c0_38 = arith.constant 0 : index
    %36 = vector.load %arg3[%c0_36, %c0_37, %c0_38] : memref<1x8x2xf32, #tpu.memory_space<vmem>>, vector<1x8x2xf32>
    %37 = vector.shape_cast %36 : vector<1x8x2xf32> to vector<8x2xf32>
    %38 = vector.shape_cast %35 : vector<8x2xf32> to vector<1x8x2xf32>
    tpu.vector_store %arg3[%c0_36, %c0_37, %c0_38], %38 {strides = array<i32>} : memref<1x8x2xf32, #tpu.memory_space<vmem>>, vector<1x8x2xf32>,
    return
  }
  func.func @transform_0(%arg0: i32) -> (i32, i32, i32) {
    %c0_i32 = arith.constant 0 : i32
    %c0_i32_0 = arith.constant 0 : i32
    %c0_i32_1 = arith.constant 0 : i32
    return %arg0, %c0_i32, %c0_i32_0 : i32, i32, i32
  }
  func.func @transform_1(%arg0: i32) -> (i32, i32) {
    %c0_i32 = arith.constant 0 : i32
    %c0_i32_0 = arith.constant 0 : i32
    %c0_i32_1 = arith.constant 0 : i32
    return %c0_i32, %c0_i32_0 : i32, i32
  }
  func.func @transform_2(%arg0: i32) -> (i32, i32, i32) {
    %c0_i32 = arith.constant 0 : i32
    %c0_i32_0 = arith.constant 0 : i32
    %c0_i32_1 = arith.constant 0 : i32
    return %arg0, %c0_i32, %c0_i32_0 : i32, i32, i32
  }
}

</mosaic_0001>

<bundles_post_ra>
// kernel: tpu_custom_call.1
= control target key start
LH: loop header
LB: loop body
LE: loop exit
PB: predicated region body
PF: predicated region fallthrough
CT: control target
= control target key end

     0   :  { %7 = vsyncpa [#allocation4], 0  ;;  %s705_s0 = inlined_call_operand.hbm [shape: f32[2,4,256], index: 0, kind: input, shape index: {}]   ;;  %s706_s1 = inlined_call_operand.hbm [shape: f32[8,20], index: 1, kind: input, shape index: {}]   ;;  %s707_s2 = inlined_call_operand.vmem [shape: f32[2,8,2], index: 2, kind: output, shape index: {}]  }
   0x1   :  { %9 = vsyncpa [#allocation4 + $0x1], 0 }
   0x2   :  { %10 = vsyncpa [#allocation6], 0  ;;  %s602_s9 = smov 0   ;;  %s604_s10 = smov 0  }
   0x3   :  { %s606_s11 = smov 0   ;;  %s608_s12 = smov 0  }
   0x4 LB: > { %s621_s13 = sadd.s32 4294967295, %s579_s12   ;;  %p36_p0 = scmp.ne.s32.totalorder %s571_s10, %s567_s9  ;;  %s579_s12 = sphi %s608_s12, %s714_s12   ;;  %s575_s11 = sphi %s606_s11, %s713_s11   ;;  %s571_s10 = sphi %s604_s10, %s712_s10   ;;  %s567_s9 = sphi %s602_s9, %s711_s9  }
   0x5   : > { %p37_p1 = scmp.eq.s32.totalorder %s621_s13, 0  ;;  %p409_p2 = scmp.ge.s32.totalorder %s579_s12, 1 }
   0x6   : > { %p94_p3 = scmp.lt.s32.totalorder %s579_s12, 3  ;;  %s106_s17 = sshll.u32 %s706_s1, 4  ;;  %s107_s17 = int_to_ptr.hbm [resolvable:$true] %s106_s17 }
   0x7   : > { %p629_p4 = por %p37_p1, %p36_p0  ;;  %s581_s19 = smov [#allocation5]  }
   0x8   : > { %p636_p5 = pnand %p409_p2, %p94_p3  ;;  %s108_s20 = sshll.u32 %s581_s19, 4  ;;  %s109_s20 = int_to_ptr.vmem [resolvable:$true] %s108_s20 }
   0x9   : > { %s645_s21 = sadd.s32 1, %s579_s12   ;;  %s23_s22 = sadd.s32 1, %s575_s11 }
   0xa   : > { %p432_p6 = pneg %p636_p5  ;;  %s20_s23 = ssub.s32 %s579_s12, %s645_s21 }
   0xb   : > { %p21_p8 = scmp.eq.s32.totalorder %s20_s23, 0  ;;  %p30_p9 = scmp.ne.s32.totalorder %s575_s11, %s571_s10 }
   0xc   : > { %p433_p7 = pnand %p432_p6, %p37_p1  ;;  %p31_p10 = scmp.eq.s32.totalorder %s579_s12, 0 }
   0xd   : > { %p441_p11 = scmp.lt.s32.totalorder %s579_s12, 2  ;;  %s119_s25 = sand.u32 1, %s575_s11  }
   0xe   : > { %435 = dma.hbm_to_vmem [thread:$0]  (!%p433_p7), %s107_s17, 128, %s109_s20, [#allocation6]  }
   0xf   : > { %s655_s24 = scalar_select %p21_p8, %s575_s11, %s23_s22  }
  0x10   : > { %p32_p12 = por %p31_p10, %p30_p9  ;;  %s412_s26 = sshll.u32 %s119_s25, 3 }
  0x11   : > { %s425_s27 = sshll.u32 %s579_s12, 3  ;;  %s123_s3 = scalar_lea.vmem [#allocation3], %s412_s26 }
  0x12   : > { %s128_s30 = scalar_lea.hbm %s705_s0, %s425_s27  ;;  %s132_s4 = sshll.u32 %s123_s3, 4  ;;  %s133_s4 = int_to_ptr.vmem [resolvable:$true] %s132_s4 }
  0x13   : > { %s130_s5 = sshll.u32 %s128_s30, 4  ;;  %p662_p13 = pnand %p441_p11, %p32_p12  ;;  %s131_s5 = int_to_ptr.hbm [resolvable:$true] %s130_s5 }
  0x14   : > { %s120_s7 = scalar_lea.sflag [#allocation4], %s119_s25  ;;  %s511_s8 = sshra.s32 %s131_s5, 4  ;;  %s512_s8 = int_to_ptr.hbm [resolvable:$true] %s511_s8 }
  0x15   : > { %s513_s9 = scalar_lea.hbm %s512_s8, 8  ;;  %p515_p2 = pneg %p662_p13 }
  0x16   : > { %p514_p0 = scmp.ne.s32.totalorder %s512_s8, %s513_s9  ;;  %s518_s16 = scalar_lea.hbm %s705_s0, 16 }
  0x17   : > { %p519_p7 = scmp.lt.s32.totalorder %s512_s8, %s705_s0  ;;  %p520_p8 = scmp.lt.s32.totalorder %s518_s16, %s513_s9 }
  0x18   : > { %p516_p3 = pnand %p515_p2, %p514_p0 }
  0x19   : > { %p521_p9 = por %p520_p8, %p519_p7 }
  0x1a   : > { %p517_p6 = pneg %p516_p3 }
  0x1c   : > { %p522_p10 = pnand %p521_p9, %p517_p6 }
  0x1e   : > { %525 = shalt.err (!%p522_p10)
}
  0x1f   : > { %439 = dma.hbm_to_vmem [thread:$0]  (!%p662_p13), %s131_s5, 128, %s133_s4, %s120_s7  }
  0x20   : > { %141 = sbr.rel (%p636_p5) target bundleno = 592 (0x250), region = 28  ;;  %s143_s20 = sand.u32 (!%p636_p5), 1, %s571_s10  }
  0x21   : > { %s416_s22 = sshll.u32 (!%p636_p5), %s143_s20, 3  ;;  %s144_s23 = scalar_lea.sflag (!%p636_p5), [#allocation4], %s143_s20 }
  0x22   : > { %s147_s25 = scalar_lea.vmem (!%p636_p5), [#allocation3], %s416_s22 }
  0x25   : > { %558 = dma.done.wait (%p629_p4), %s144_s23, 128  }
  0x26   : > { %560 = vsyncadd (%p629_p4), %s144_s23, 4294967168 }
  0x27   : > { %562 = dma.done.wait (%p37_p1), [#allocation6], 128  }
  0x28   : > { %564 = vsyncadd (%p37_p1), [#allocation6], 4294967168  ;;  %v179_v0 = vld [vmem:[%s147_s25] sm:$0xff]  ;;  %s582_s18 = smov 32   ;;  %s583_s14 = smov 112   ;;  %vm177_vm0 = vcmask 257024  }
  0x29   : > { %181 = vst [vmem:[#allocation1] ss:$2 sm:$0xff] %v179_v0  ;;  %s584_s26 = smov 96   ;;  %s585_s27 = smov 16   ;;  %vm192_vm1 = vcmask 1043712   ;;  %vm223_vm2 = vcmask 1048452  }
  0x2a   : > { %v586_v12 = vmov 0.0   ;;  %vm188_vm3 = vcmask 261120   ;;  %vm242_vm4 = vcmask 1044224   ;;  %vm195_vm5 = vcmask 130052   ;;  %v260_v28 = vld [vmem:[#allocation5] sm:$0xff]  ;;  %p173_p1 = scmp.lt.s32.totalorder %s621_s13, 1 }
  0x2b   : > { %178 = vst.msk [vmem:[#allocation2] sm:$0xf] %vm177_vm0, %v586_v12  ;;  %vm235_vm6 = vcmask 916480   ;;  %vm240_vm7 = vcmask 916484   ;;  %vm253_vm8 = vcmask 785408   ;;  %vm258_vm9 = vcmask 781312  }
  0x2c   : > { %224 = vst.msk [vmem:[#allocation2 + $0x18] sm:$0xf0] %vm223_vm2, %v586_v12  ;;  %vm207_vm10 = vcmask 130048   ;;  %vm211_vm11 = vcmask 1047684   ;;  %vm271_vm12 = vcmask 1043456   ;;  %vm267_vm13 = vcmask 162816  }
  0x2d   : > { %243 = vst.msk [vmem:[#allocation2 + $0x28] sm:$0xf] %vm242_vm4, %v586_v12  ;;  %s716_s13 = smov (!%p173_p1, %s621_s13), 1  ;;  %vm329_vm14 = vcmask 7168   ;;  %vm331_vm15 = vcmask 15360  }
  0x2e   : > { %196 = vst.msk [vmem:[#allocation2] sm:$0xf0] %vm195_vm5, %v586_v12  ;;  %s418_s28 = sshll.u32 %s716_s13, 3 }
  0x2f   : > { %s176_s3 = scalar_lea.vmem %s707_s2, %s418_s28 }
  0x30   : > { %v182_v1 = vld.sshfl [vmem:[#allocation1] sm:$0xff pattern:$0x75316420]  ;;  %v183_v2 = vld.sshfl [vmem:[#allocation1 + $0x8] sm:$0xff pattern:$0x75316420] }
  0x31   : > { %200 = vst [vmem:[#allocation1 + $0x1] ss:$2 sm:$0xff] %v179_v0  ;;  %184 = vrot.lane.b32.xlu2 %v182_v1, %s582_s18 }
  0x38   : > { %v201_v3 = vld.sshfl [vmem:[#allocation1] sm:$0xff pattern:$0x75316420]  ;;  %v202_v4 = vld.sshfl [vmem:[#allocation1 + $0x8] sm:$0xff pattern:$0x75316420] }
  0x39   : > { %216 = vst [vmem:[#allocation1] ss:$2 sm:$0xff] %v179_v0  ;;  %186 = vrot.lane.b32.xlu2 %v183_v2, %s582_s18 }
  0x40   : > { %v217_v5 = vld.sshfl [vmem:[#allocation1] sm:$0xff pattern:$0x75316420]  ;;  %v218_v6 = vld.sshfl [vmem:[#allocation1 + $0x8] sm:$0xff pattern:$0x75316420] }
  0x41   : > { %228 = vst [vmem:[#allocation1 + $0x1] ss:$2 sm:$0xff] %v179_v0 }
  0x42   : > { %221 = vst [vmem:[#allocation2 + $0x10] sm:$0xf] %v217_v5 }
  0x43   : > { %222 = vst [vmem:[#allocation2 + $0x18] sm:$0xf] %v218_v6 }
  0x48   : > { %v229_v7 = vld.sshfl [vmem:[#allocation1] sm:$0xff pattern:$0x75316420]  ;;  %v230_v8 = vld.sshfl [vmem:[#allocation1 + $0x8] sm:$0xff pattern:$0x75316420] }
  0x49   : > { %231 = vrot.lane.b32.xlu1 %v229_v7, %s583_s14  ;;  %246 = vst [vmem:[#allocation1] ss:$2 sm:$0xff] %v179_v0 }
  0x50   : > { %v247_v9 = vld.sshfl [vmem:[#allocation1] sm:$0xff pattern:$0x75316420]  ;;  %v248_v10 = vld.sshfl [vmem:[#allocation1 + $0x8] sm:$0xff pattern:$0x75316420] }
  0x51   : > { %233 = vrot.lane.b32.xlu1 %v230_v8, %s583_s14  ;;  %249 = vrot.lane.b32.xlu0 %v247_v9, %s584_s26 }
  0x59   : > { %251 = vrot.lane.b32.xlu0 %v248_v10, %s584_s26  ;;  %205 = vrot.lane.b32.xlu1 %v202_v4, %s585_s27 }
  0x61   : > { %203 = vrot.lane.b32.xlu0 %v201_v3, %s585_s27 }
  0x8b   : > { %v185_v11 = vpop.permute.xlu2 %184 }
  0x8c   : > { %193 = vst.msk [vmem:[#allocation2] sm:$0xf] %vm192_vm1, %v185_v11 }
  0x93   : > { %v187_v13 = vpop.permute.xlu2 %186 }
  0x94   : > { %v189_v14 = vsel %vm188_vm3, %v185_v11, %v187_v13 }
  0x95   : > { %194 = vst [vmem:[#allocation2 + $0x8] sm:$0xf] %v189_v14 }
  0xbb   : > { %v232_v15 = vpop.permute.xlu1 %231 }
  0xc3   : > { %v234_v16 = vpop.permute.xlu1 %233  ;;  %v250_v17 = vpop.permute.xlu0 %249 }
  0xc4   : > { %v236_v18 = vsel %vm235_vm6, %v232_v15, %v234_v16  ;;  %241 = vst.msk [vmem:[#allocation2 + $0x18] sm:$0xf0] %vm240_vm7, %v234_v16 }
  0xc5   : > { %239 = vst [vmem:[#allocation2 + $0x10] sm:$0xf0] %v236_v18 }
  0xcb   : > { %v252_v19 = vpop.permute.xlu0 %251  ;;  %v206_v21 = vpop.permute.xlu1 %205  ;;  %v264_v26 = vld [vmem:[#allocation2 + $0x18] sm:$0xff] }
  0xcc   : > { %v254_v20 = vsel %vm253_vm8, %v250_v17, %v252_v19  ;;  %259 = vst.msk [vmem:[#allocation2 + $0x28] sm:$0xf] %vm258_vm9, %v252_v19  ;;  %v263_v27 = vld [vmem:[#allocation2 + $0x10] sm:$0xff] }
  0xcd   : > { %257 = vst [vmem:[#allocation2 + $0x20] sm:$0xf] %v254_v20 }
  0xd3   : > { %v204_v22 = vpop.permute.xlu0 %203  ;;  %v266_v23 = vld [vmem:[#allocation2 + $0x28] sm:$0xf] }
  0xd4   : > { %v208_v24 = vsel %vm207_vm10, %v204_v22, %v206_v21  ;;  %212 = vst.msk [vmem:[#allocation2] sm:$0xf0] %vm211_vm11, %v204_v22  ;;  %421 = vmatpush.msk.msra.mxu1 %vm271_vm12, %v266_v23  ;;  %v265_v25 = vld [vmem:[#allocation2 + $0x20] sm:$0xf] }
  0xd5   : > { %213 = vst [vmem:[#allocation2 + $0x8] sm:$0xf0] %v208_v24  ;;  %419 = vmatpush.msk.msra.mxu0 %vm271_vm12, %v265_v25 }
  0xd6   : > { %312 = vmatpush.msra.mxu1 %v264_v26 }
  0xd7   : > { %292 = vmatpush.msra.mxu0 %v263_v27 }
  0xdb   : > { %v261_v29 = vld [vmem:[#allocation2] sm:$0xff] }
  0xdc   : > { %293 = vmatpush.msra.mxu0 %v261_v29  ;;  %v262_v30 = vld [vmem:[#allocation2 + $0x8] sm:$0xff] }
  0xdd   : > { %313 = vmatpush.msra.mxu1 %v262_v30  ;;  %420 = vmatmul.msk.f32.vlgmr.msra.gmra.mxu0 %vm267_vm13, %v260_v28 }
  0xde   : > { %422 = vmatmul.msk.f32.vlgmr.msra.gmra.mxu1 %vm267_vm13, %v260_v28 }
 0x15a   : > { %v295_v31 = vpop.f32.mrf.mxu0 }
 0x15b   : > { %v315_v32 = vpop.f32.mrf.mxu1 }
 0x15c   : > { %v318_v33 = vadd.f32 %v315_v32, %v295_v31 }
 0x15e   : > { %319 = vadd.xlane.f32.xlu2 %v318_v33 }
 0x1d1   : > { %v320_v34 = vpop.xlane.xlu2 %319 }
 0x1d2   : > { %v321_v35 = vmul.f32 0.00390625, %v320_v34 }
 0x1d4   : > { %v322_v36 = vsub.f32 %v295_v31, %v321_v35  ;;  %v323_v37 = vsub.f32 %v315_v32, %v321_v35 }
 0x1d6   : > { %v324_v38 = vmul.f32 %v322_v36, %v322_v36  ;;  %v325_v39 = vmul.f32 %v323_v37, %v323_v37 }
 0x1d8   : > { %v326_v40 = vadd.f32 %v325_v39, %v324_v38 }
 0x1da   : > { %327 = vadd.xlane.f32.xlu0 %v326_v40 }
 0x24d   : > { %v328_v41 = vpop.xlane.xlu0 %327 }
 0x24e   : > { %v330_v42 = vsel %vm329_vm14, %v320_v34, %v328_v41 }
 0x24f   : > { %332 = vst.msk [vmem:[%s176_s3] sm:$0xff] %vm331_vm15, %v330_v42 }
 0x250 PF: > { %p13_p4 = scmp.ge.s32.totalorder %s645_s21, 4   ;;  %s711_s9 = smov %s571_s10 }
 0x251   : > { %s712_s10 = smov %s575_s11  ;;  %s713_s11 = smov %s655_s24 }
 0x252   : > { %s714_s12 = smov %s645_s21  ;;  %15 = sbr.rel (!%p13_p4) target bundleno = 4 (0x4), region = 74 }
 0x257   :  { %352 = vsyncpa [#allocation4], 1 }
 0x258   :  { %354 = vsyncpa [#allocation4 + $0x1], 1 }
 0x259   :  { %355 = vsyncpa [#allocation6], 1 }

</bundles_post_ra>
